<compile_context>
chip_gen: v7x
topology: tpu7x:2x2x1
jax: 0.10.0
libtpu: 0.0.40
codegen_flags: <defaults>
</compile_context>

<pallas_src>
import functools
import math

import jax
import jax.numpy as jnp
from jax.experimental import pallas as pl
from jax.experimental.pallas import tpu as pltpu


def _round_up(x, m):
    return ((x + m - 1) // m) * m


# ------------------------- one-time constant preparation ---------------------

def make_mfcc_constants(dim_encoded, sample_rate=16000, n_fft=321, top_db=80.0):
    """Precompute windowed DFT bases, mel filterbank and DCT matrix (hoisted
    out of the per-forward path)."""
    n_freqs = n_fft // 2 + 1                       # 161
    n_mels = max(128, dim_encoded)                 # torchaudio melkwargs
    n_mfcc = dim_encoded
    f_pad = _round_up(n_freqs, 128)                # 256: lane-dense intermediate

    # periodic Hann window (torch.hann_window default)
    n = jnp.arange(n_fft, dtype=jnp.float32)
    window = 0.5 * (1.0 - jnp.cos(2.0 * jnp.pi * n / n_fft))

    # one-sided real-DFT bases with the window folded in.  Angles reduced
    # mod n_fft in integer arithmetic for f32 accuracy.
    ni = jnp.arange(n_fft, dtype=jnp.int32)[:, None]
    fi = jnp.arange(n_freqs, dtype=jnp.int32)[None, :]
    ang = (2.0 * jnp.pi / n_fft) * ((ni * fi) % n_fft).astype(jnp.float32)
    bcos = window[:, None] * jnp.cos(ang)          # [n_fft, n_freqs]
    bsin = window[:, None] * jnp.sin(ang)
    bcos = jnp.pad(bcos, ((0, 0), (0, f_pad - n_freqs))).astype(jnp.float32)
    bsin = jnp.pad(bsin, ((0, 0), (0, f_pad - n_freqs))).astype(jnp.float32)

    # mel filterbank: htk scale, norm=None (torchaudio.functional.melscale_fbanks)
    f_max = float(sample_rate // 2)
    all_freqs = jnp.linspace(0.0, float(sample_rate // 2), n_freqs)
    m_min = 2595.0 * jnp.log10(1.0 + 0.0 / 700.0)
    m_max = 2595.0 * jnp.log10(1.0 + f_max / 700.0)
    m_pts = jnp.linspace(m_min, m_max, n_mels + 2)
    f_pts = 700.0 * (10.0 ** (m_pts / 2595.0) - 1.0)
    f_diff = f_pts[1:] - f_pts[:-1]
    slopes = f_pts[None, :] - all_freqs[:, None]                 # [n_freqs, n_mels+2]
    down = -slopes[:, :-2] / f_diff[:-1]
    up = slopes[:, 2:] / f_diff[1:]
    fb = jnp.maximum(0.0, jnp.minimum(down, up))                 # [n_freqs, n_mels]
    fb = jnp.pad(fb, ((0, f_pad - n_freqs), (0, 0))).astype(jnp.float32)

    # DCT-II, ortho norm (torchaudio.functional.create_dct) -> [n_mels, n_mfcc]
    nm = jnp.arange(n_mels, dtype=jnp.float32)
    km = jnp.arange(n_mfcc, dtype=jnp.float32)[:, None]
    dct = jnp.cos(math.pi / n_mels * (nm + 0.5) * km)            # [n_mfcc, n_mels]
    dct = dct.at[0].multiply(1.0 / math.sqrt(2.0))
    dct = dct * math.sqrt(2.0 / n_mels)
    dct_mat = dct.T.astype(jnp.float32)                          # [n_mels, n_mfcc]

    return dict(n_fft=n_fft, hop=n_fft // 2, n_freqs=n_freqs, f_pad=f_pad,
                n_mels=n_mels, n_mfcc=n_mfcc, top_db=float(top_db),
                bcos=bcos, bsin=bsin, fb=fb, dct=dct_mat)


# ------------------------------ Pallas kernels -------------------------------

def _mel_db_kernel(frames_ref, bcos_ref, bsin_ref, fb_ref, mel_ref, tmax_ref):
    """Windowed real-DFT (two matmuls) -> power -> mel matmul -> 10*log10.
    Also emits a per-tile (per-lane) max slab for the top_db reference."""
    x = frames_ref[...]                                            # [TN, n_fft]
    re = jnp.dot(x, bcos_ref[...], preferred_element_type=jnp.float32)
    im = jnp.dot(x, bsin_ref[...], preferred_element_type=jnp.float32)
    power = re * re + im * im                                      # [TN, Fpad]
    mel = jnp.dot(power, fb_ref[...], preferred_element_type=jnp.float32)
    # 10*log10(clamp(mel, 1e-10))  -- AmplitudeToDB('power'), ref=1.0
    mel_db = (10.0 / math.log(10.0)) * jnp.log(jnp.maximum(mel, 1e-10))
    mel_ref[...] = mel_db.astype(mel_ref.dtype)
    lane_max = jnp.max(mel_db, axis=0, keepdims=True)              # [1, n_mels]
    tmax_ref[...] = jnp.broadcast_to(lane_max, tmax_ref.shape).astype(tmax_ref.dtype)


def _dct_kernel(gmax_ref, mel_ref, dct_ref, out_ref, *, top_db):
    """top_db clamp against the global (whole-batch) max, fused with DCT."""
    thr = gmax_ref[0, 0] - top_db
    mel_db = jnp.maximum(mel_ref[...], thr)
    out_ref[...] = jnp.dot(mel_db, dct_ref[...],
                           preferred_element_type=jnp.float32).astype(out_ref.dtype)


# --------------------------------- forward -----------------------------------

def mfcc_encoder_forward(x, consts, row_tile=256):
    """MFCCEncoder.forward: x -> view(B, -1) -> MFCC -> permute(0, 2, 1).
    Returns [B, T, n_mfcc]."""
    n_fft, hop = consts['n_fft'], consts['hop']
    n_mels, n_mfcc, f_pad = consts['n_mels'], consts['n_mfcc'], consts['f_pad']

    B = x.shape[0]
    xw = x.reshape(B, -1).astype(jnp.float32)                      # x.view(B, -1)
    L = xw.shape[1]

    # torch.stft(center=True, pad_mode='reflect') framing (wrapper-side XLA).
    # TODO(synk): overlapping frame extraction could move in-kernel with
    # Element-indexed DMA; kept as an XLA gather for simplicity.
    pad = n_fft // 2
    xpad = jnp.pad(xw, ((0, 0), (pad, pad)), mode='reflect')
    T = 1 + (L + 2 * pad - n_fft) // hop
    idx = (jnp.arange(T) * hop)[:, None] + jnp.arange(n_fft)[None, :]
    frames = xpad[:, idx].reshape(B * T, n_fft)                    # [B*T, n_fft]

    N = B * T
    tn = min(row_tile, _round_up(N, 8))
    n_padded = _round_up(N, tn)
    if n_padded != N:
        # zero rows -> mel_db = -100 dB (the floor), so they never affect the max
        frames = jnp.pad(frames, ((0, n_padded - N), (0, 0)))
    grid = n_padded // tn

    # ---- kernel 1: windowed DFT + power + mel + log10 (+ per-tile max) ------
    mel_db, tile_max = pl.pallas_call(
        _mel_db_kernel,
        out_shape=(jax.ShapeDtypeStruct((n_padded, n_mels), jnp.float32),
                   jax.ShapeDtypeStruct((grid * 8, n_mels), jnp.float32)),
        grid=(grid,),
        in_specs=[pl.BlockSpec((tn, n_fft), lambda i: (i, 0)),
                  pl.BlockSpec((n_fft, f_pad), lambda i: (0, 0)),
                  pl.BlockSpec((n_fft, f_pad), lambda i: (0, 0)),
                  pl.BlockSpec((f_pad, n_mels), lambda i: (0, 0))],
        out_specs=(pl.BlockSpec((tn, n_mels), lambda i: (i, 0)),
                   pl.BlockSpec((8, n_mels), lambda i: (i, 0))),
        compiler_params=pltpu.CompilerParams(
            dimension_semantics=("parallel",)),
    )(frames, consts['bcos'], consts['bsin'], consts['fb'])

    # AmplitudeToDB top_db reference: single global max over the whole batch
    # (torchaudio packs the batch dim as channels for a 3-D mel spectrogram).
    gmax = jnp.max(tile_max).reshape(1, 1)

    # ---- kernel 2: top_db clamp + DCT ---------------------------------------
    mfcc = pl.pallas_call(
        functools.partial(_dct_kernel, top_db=consts['top_db']),
        out_shape=jax.ShapeDtypeStruct((n_padded, n_mfcc), jnp.float32),
        grid=(grid,),
        in_specs=[pl.BlockSpec(memory_space=pltpu.MemorySpace.SMEM),
                  pl.BlockSpec((tn, n_mels), lambda i: (i, 0)),
                  pl.BlockSpec((n_mels, n_mfcc), lambda i: (0, 0))],
        out_specs=pl.BlockSpec((tn, n_mfcc), lambda i: (i, 0)),
        compiler_params=pltpu.CompilerParams(
            dimension_semantics=("parallel",)),
    )(gmax, mel_db, consts['dct'])

    # output layout already [B*T, n_mfcc] == permute(0, 2, 1) of [B, n_mfcc, T]
    return mfcc[:N].reshape(B, T, n_mfcc)


def make_mfcc_encoder(dim_encoded, sample_rate=16000, row_tile=256):
    consts = make_mfcc_constants(dim_encoded, sample_rate=sample_rate)

    def forward(x):
        return mfcc_encoder_forward(x, consts, row_tile=row_tile)

    return forward


# ----------------------------------- main ------------------------------------

if __name__ == "__main__":
    key = jax.random.PRNGKey(0)

    B, L = 2, 3200                 # 0.2 s of 16 kHz audio, [B, 1, L] waveform
    dim_encoded = 128              # n_mfcc = 128, n_mels = max(128, 128) = 128

    x = jax.random.normal(key, (B, 1, L), jnp.float32)

    encoder = jax.jit(make_mfcc_encoder(dim_encoded))
    out = encoder(x)
    out = jax.block_until_ready(out)

    n_fft, hop = 321, 160
    T = 1 + (L + 2 * (n_fft // 2) - n_fft) // hop    # center=True frame count
    assert out.shape == (B, T, dim_encoded), out.shape
    assert bool(jnp.all(jnp.isfinite(out)))
    print("KERNEL_OK")
</pallas_src>

<mosaic_0001>
module attributes {stable_mosaic.version = 11 : i64} {
  func.func @_mel_db_kernel(%arg0: i32, %arg1: memref<40x321xf32, #tpu.memory_space<vmem>>, %arg2: memref<321x256xf32, #tpu.memory_space<vmem>>, %arg3: memref<321x256xf32, #tpu.memory_space<vmem>>, %arg4: memref<256x128xf32, #tpu.memory_space<vmem>>, %arg5: memref<40x128xf32, #tpu.memory_space<vmem>>, %arg6: memref<8x128xf32, #tpu.memory_space<vmem>>) attributes {dimension_semantics = [#tpu.dimension_semantics<parallel>], iteration_bounds = array<i64: 1>, scalar_prefetch = 0 : i64, scratch_operands = 0 : i64, tpu.core_type = #tpu.core_type<tc>, window_params = [{transform_indices = @transform_0, window_bounds = array<i64: 40, 321>}, {pipeline_mode = #tpu.pipeline_mode<synchronous>, transform_indices = @transform_1, window_bounds = array<i64: 321, 256>}, {pipeline_mode = #tpu.pipeline_mode<synchronous>, transform_indices = @transform_2, window_bounds = array<i64: 321, 256>}, {pipeline_mode = #tpu.pipeline_mode<synchronous>, transform_indices = @transform_3, window_bounds = array<i64: 256, 128>}, {transform_indices = @transform_4, window_bounds = array<i64: 40, 128>}, {transform_indices = @transform_5, window_bounds = array<i64: 8, 128>}]} {
    %c0 = arith.constant 0 : index
    %c0_0 = arith.constant 0 : index
    %0 = vector.load %arg1[%c0, %c0_0] : memref<40x321xf32, #tpu.memory_space<vmem>>, vector<40x321xf32>
    %c0_1 = arith.constant 0 : index
    %c0_2 = arith.constant 0 : index
    %1 = vector.load %arg2[%c0_1, %c0_2] : memref<321x256xf32, #tpu.memory_space<vmem>>, vector<321x256xf32>
    %cst = arith.constant dense<0.000000e+00> : vector<40x256xf32>
    %2 = tpu.matmul %0, %1, %cst {dimension_numbers = #tpu.dot_dimension_numbers<[1], [0], [0], [1], [0, 0, 1, 1], [], []>} : vector<40x321xf32>, vector<321x256xf32>, vector<40x256xf32> -> vector<40x256xf32>
    %c0_3 = arith.constant 0 : index
    %c0_4 = arith.constant 0 : index
    %3 = vector.load %arg3[%c0_3, %c0_4] : memref<321x256xf32, #tpu.memory_space<vmem>>, vector<321x256xf32>
    %cst_5 = arith.constant dense<0.000000e+00> : vector<40x256xf32>
    %4 = tpu.matmul %0, %3, %cst_5 {dimension_numbers = #tpu.dot_dimension_numbers<[1], [0], [0], [1], [0, 0, 1, 1], [], []>} : vector<40x321xf32>, vector<321x256xf32>, vector<40x256xf32> -> vector<40x256xf32>
    %5 = arith.mulf %2, %2 : vector<40x256xf32>
    %6 = arith.mulf %4, %4 : vector<40x256xf32>
    %7 = arith.addf %5, %6 : vector<40x256xf32>
    %c0_6 = arith.constant 0 : index
    %c0_7 = arith.constant 0 : index
    %8 = vector.load %arg4[%c0_6, %c0_7] : memref<256x128xf32, #tpu.memory_space<vmem>>, vector<256x128xf32>
    %cst_8 = arith.constant dense<0.000000e+00> : vector<40x128xf32>
    %9 = tpu.matmul %7, %8, %cst_8 {dimension_numbers = #tpu.dot_dimension_numbers<[1], [0], [0], [1], [0, 0, 1, 1], [], []>} : vector<40x256xf32>, vector<256x128xf32>, vector<40x128xf32> -> vector<40x128xf32>
    %cst_9 = arith.constant 1.000000e-10 : f32
    %10 = vector.broadcast %cst_9 : f32 to vector<40x128xf32>
    %11 = arith.maximumf %9, %10 : vector<40x128xf32>
    %12 = math.log %11 : vector<40x128xf32>
    %cst_10 = arith.constant 4.34294462 : f32
    %13 = vector.broadcast %cst_10 : f32 to vector<40x128xf32>
    %14 = arith.mulf %13, %12 : vector<40x128xf32>
    %c0_11 = arith.constant 0 : index
    %c0_12 = arith.constant 0 : index
    %15 = vector.load %arg5[%c0_11, %c0_12] : memref<40x128xf32, #tpu.memory_space<vmem>>, vector<40x128xf32>
    tpu.vector_store %arg5[%c0_11, %c0_12], %14 {strides = array<i32>} : memref<40x128xf32, #tpu.memory_space<vmem>>, vector<40x128xf32>,
    %cst_13 = arith.constant dense<0xFF800000> : vector<128xf32>
    %16 = vector.multi_reduction <maximumf>, %14, %cst_13 [0] : vector<40x128xf32> to vector<128xf32>
    %17 = vector.shape_cast %16 : vector<128xf32> to vector<1x128xf32>
    %18 = vector.shape_cast %17 : vector<1x128xf32> to vector<1x128xf32>
    %19 = vector.broadcast %18 : vector<1x128xf32> to vector<8x128xf32>
    %c0_14 = arith.constant 0 : index
    %c0_15 = arith.constant 0 : index
    %20 = vector.load %arg6[%c0_14, %c0_15] : memref<8x128xf32, #tpu.memory_space<vmem>>, vector<8x128xf32>
    tpu.vector_store %arg6[%c0_14, %c0_15], %19 {strides = array<i32>} : memref<8x128xf32, #tpu.memory_space<vmem>>, vector<8x128xf32>,
    return
  }
  func.func @transform_0(%arg0: i32) -> (i32, i32) {
    %c0_i32 = arith.constant 0 : i32
    %c0_i32_0 = arith.constant 0 : i32
    return %arg0, %c0_i32 : i32, i32
  }
  func.func @transform_1(%arg0: i32) -> (i32, i32) {
    %c0_i32 = arith.constant 0 : i32
    %c0_i32_0 = arith.constant 0 : i32
    %c0_i32_1 = arith.constant 0 : i32
    return %c0_i32, %c0_i32_0 : i32, i32
  }
  func.func @transform_2(%arg0: i32) -> (i32, i32) {
    %c0_i32 = arith.constant 0 : i32
    %c0_i32_0 = arith.constant 0 : i32
    %c0_i32_1 = arith.constant 0 : i32
    return %c0_i32, %c0_i32_0 : i32, i32
  }
  func.func @transform_3(%arg0: i32) -> (i32, i32) {
    %c0_i32 = arith.constant 0 : i32
    %c0_i32_0 = arith.constant 0 : i32
    %c0_i32_1 = arith.constant 0 : i32
    return %c0_i32, %c0_i32_0 : i32, i32
  }
  func.func @transform_4(%arg0: i32) -> (i32, i32) {
    %c0_i32 = arith.constant 0 : i32
    %c0_i32_0 = arith.constant 0 : i32
    return %arg0, %c0_i32 : i32, i32
  }
  func.func @transform_5(%arg0: i32) -> (i32, i32) {
    %c0_i32 = arith.constant 0 : i32
    %c0_i32_0 = arith.constant 0 : i32
    return %arg0, %c0_i32 : i32, i32
  }
}

module attributes {stable_mosaic.version = 11 : i64} {
  func.func @_dct_kernel(%arg0: i32, %arg1: memref<1x1xf32, #tpu.memory_space<smem>>, %arg2: memref<40x128xf32, #tpu.memory_space<vmem>>, %arg3: memref<128x128xf32, #tpu.memory_space<vmem>>, %arg4: memref<40x128xf32, #tpu.memory_space<vmem>>) attributes {dimension_semantics = [#tpu.dimension_semantics<parallel>], iteration_bounds = array<i64: 1>, scalar_prefetch = 0 : i64, scratch_operands = 0 : i64, tpu.core_type = #tpu.core_type<tc>, window_params = [{transform_indices = @transform_0, window_bounds = array<i64: 1, 1>}, {transform_indices = @transform_1, window_bounds = array<i64: 40, 128>}, {pipeline_mode = #tpu.pipeline_mode<synchronous>, transform_indices = @transform_2, window_bounds = array<i64: 128, 128>}, {transform_indices = @transform_3, window_bounds = array<i64: 40, 128>}]} {
    %c0 = arith.constant 0 : index
    %c0_0 = arith.constant 0 : index
    %0 = memref.load %arg1[%c0, %c0_0] : memref<1x1xf32, #tpu.memory_space<smem>>
    %cst = arith.constant 8.000000e+01 : f32
    %1 = arith.subf %0, %cst : f32
    %c0_1 = arith.constant 0 : index
    %c0_2 = arith.constant 0 : index
    %2 = vector.load %arg2[%c0_1, %c0_2] : memref<40x128xf32, #tpu.memory_space<vmem>>, vector<40x128xf32>
    %3 = vector.broadcast %1 : f32 to vector<40x128xf32>
    %4 = arith.maximumf %2, %3 : vector<40x128xf32>
    %c0_3 = arith.constant 0 : index
    %c0_4 = arith.constant 0 : index
    %5 = vector.load %arg3[%c0_3, %c0_4] : memref<128x128xf32, #tpu.memory_space<vmem>>, vector<128x128xf32>
    %cst_5 = arith.constant dense<0.000000e+00> : vector<40x128xf32>
    %6 = tpu.matmul %4, %5, %cst_5 {dimension_numbers = #tpu.dot_dimension_numbers<[1], [0], [0], [1], [0, 0, 1, 1], [], []>} : vector<40x128xf32>, vector<128x128xf32>, vector<40x128xf32> -> vector<40x128xf32>
    %c0_6 = arith.constant 0 : index
    %c0_7 = arith.constant 0 : index
    %7 = vector.load %arg4[%c0_6, %c0_7] : memref<40x128xf32, #tpu.memory_space<vmem>>, vector<40x128xf32>
    tpu.vector_store %arg4[%c0_6, %c0_7], %6 {strides = array<i32>} : memref<40x128xf32, #tpu.memory_space<vmem>>, vector<40x128xf32>,
    return
  }
  func.func @transform_0(%arg0: i32) -> (i32, i32) {
    %c0_i32 = arith.constant 0 : i32
    %c0_i32_0 = arith.constant 0 : i32
    %c0_i32_1 = arith.constant 0 : i32
    return %c0_i32, %c0_i32_0 : i32, i32
  }
  func.func @transform_1(%arg0: i32) -> (i32, i32) {
    %c0_i32 = arith.constant 0 : i32
    %c0_i32_0 = arith.constant 0 : i32
    return %arg0, %c0_i32 : i32, i32
  }
  func.func @transform_2(%arg0: i32) -> (i32, i32) {
    %c0_i32 = arith.constant 0 : i32
    %c0_i32_0 = arith.constant 0 : i32
    %c0_i32_1 = arith.constant 0 : i32
    return %c0_i32, %c0_i32_0 : i32, i32
  }
  func.func @transform_3(%arg0: i32) -> (i32, i32) {
    %c0_i32 = arith.constant 0 : i32
    %c0_i32_0 = arith.constant 0 : i32
    return %arg0, %c0_i32 : i32, i32
  }
}

</mosaic_0001>

<bundles_post_ra>
// kernel: reverse.1
= control target key start
LH: loop header
LB: loop body
LE: loop exit
PB: predicated region body
PF: predicated region fallthrough
CT: control target
= control target key end

     0   :  { %v2_v0 = vlaneseq  ;;  %s311_s0 = inlined_call_operand.vmem [shape: f32[2,256], index: 0, kind: input, shape index: {}]   ;;  %s312_s1 = inlined_call_operand.vmem [shape: f32[2,256], index: 1, kind: output, shape index: {}]  }
   0x2   :  { %v3_v1 = vsub.s32 127, %v2_v0 }
   0x4   :  { %4 = vset.pattern.permute.xlu0 %v3_v1 }
   0x5   :  { %s271_s6 = smov 0   ;;  %s273_s7 = smov 0  }
   0x6   :  { %s275_s8 = smov 0  }
   0x7 LB: > { %s201_s9 = sadd.s32 4294967295, %s259_s8   ;;  %s19_s10 = sadd.s32 1, %s255_s7  ;;  %s259_s8 = sphi %s275_s8, %s10_s8   ;;  %s255_s7 = sphi %s273_s7, %s314_s7   ;;  %s251_s6 = sphi %s271_s6, %s313_s6  }
   0x8   : > { %p20_p0 = scmp.ge.s32.totalorder %s19_s10, 2  ;;  %p203_p1 = scmp.ge.s32.totalorder %s259_s8, 2 }
   0x9   : > { %s38_s11 = sand.u32 (!%p203_p1), 1, %s259_s8   ;;  %s41_s12 = ssub.s32 (!%p203_p1), 1, %s255_s7 }
   0xa   : > { %s316_s10 = smov (%p20_p0, %s19_s10), 0  ;;  %36 = sbr.rel (%p203_p1) target bundleno = 17 (0x11), region = 16 }
   0xb   : > { %s204_s13 = sshll.u32 (!%p203_p1), %s38_s11, 1  ;;  %s205_s14 = sshll.u32 (!%p203_p1), %s41_s12, 1 }
   0xc   : > { %s45_s17 = scalar_lea.vmem (!%p203_p1), %s311_s0, %s205_s14  ;;  %s40_s18 = scalar_lea.vmem (!%p203_p1), [#allocation1], %s204_s13 }
   0xd   : > { %v61_v2 = vld [vmem:[%s45_s17] sm:$0x3] (!%p203_p1) }
   0xe   : > { %62 = vst [vmem:[%s40_s18] sm:$0x3] (!%p203_p1), %v61_v2 }
  0x11 PF: > { %p206_p2 = scmp.ge.s32.totalorder %s259_s8, 1  ;;  %p78_p3 = scmp.lt.s32.totalorder %s259_s8, 3 }
  0x13   : > { %p79_p4 = pnand %p206_p2, %p78_p3 }
  0x14   : > { %s89_s19 = sand.u32 (!%p79_p4), 1, %s201_s9   ;;  %s210_s23 = sshll.u32 (!%p79_p4), %s251_s6, 1 }
  0x15   : > { %82 = sbr.rel (%p79_p4) target bundleno = 177 (0xb1), region = 50  ;;  %s207_s20 = sshll.u32 (!%p79_p4), %s89_s19, 1 }
  0x16   : > { %s91_s21 = scalar_lea.vmem (!%p79_p4), [#allocation1], %s207_s20  ;;  %s95_s22 = scalar_lea.vmem (!%p79_p4), [#allocation3], %s207_s20 }
  0x17   : > { %v98_v3 = vld [vmem:[%s91_s21] sm:$0x3] (!%p79_p4)  ;;  %s118_s26 = scalar_lea.vmem (!%p79_p4), %s312_s1, %s210_s23 }
  0x18   : > { %99 = vst [vmem:[#allocation0] sm:$0x3] (!%p79_p4), %v98_v3 }
  0x1f   : > { %v101_v4 = vld [vmem:[#allocation0] sm:$0xff] }
  0x20   : > { %102 = vperm.xlu0 %4, %v101_v4  }
  0x9f   : > { %v103_v5 = vpop.permute.xlu0 %102 }
  0xa0   : > { %104 = vst [vmem:[#allocation2] sm:$0xff] %v103_v5 }
  0xa7   : > { %v108_v6 = vld [vmem:[#allocation2] sm:$0x3] }
  0xa8   : > { %110 = vst [vmem:[%s95_s22] sm:$0x3] %v108_v6 }
  0xaf   : > { %v134_v7 = vld [vmem:[%s95_s22] sm:$0x3] }
  0xb0   : > { %135 = vst [vmem:[%s118_s26] sm:$0x3] %v134_v7 }
  0xb1 PF: > { %s10_s8 = sadd.s32 1, %s259_s8   ;;  %s313_s6 = smov %s255_s7 }
  0xb2   : > { %p7_p5 = scmp.ge.s32.totalorder %s10_s8, 4   ;;  %s314_s7 = smov %s316_s10 }
  0xb4   :  { %9 = sbr.rel (!%p7_p5) target bundleno = 7 (0x7), region = 110 }

// kernel: forward.3
= control target key start
LH: loop header
LB: loop body
LE: loop exit
PB: predicated region body
PF: predicated region fallthrough
CT: control target
= control target key end

     0   :  { %v255_v0 = vmov 0.0|0.0   ;;  %vm256_vm0 = vmmov 0   ;;  %v257_v6 = vmov 0.0   ;;  %s385_s2 = inlined_call_operand.vmem [shape: f32[128,128], index: 2, kind: input, shape index: {}]   ;;  %s386_s0 = inlined_call_operand.<no memory space> [shape: f32[1,1], index: 0, kind: input, shape index: {}]   ;;  %s387_s1 = inlined_call_operand.vmem [shape: f32[40,128], index: 1, kind: input, shape index: {}]   ;;  %s388_s3 = inlined_call_operand.vmem [shape: f32[40,128], index: 3, kind: output, shape index: {}]  }
   0x1   :  { %212 = vmatprep.subr.bf16.mxu0 %v255_v0  ;;  %v28_v1 = vld [vmem:[%s385_s2] sm:$0xff]  ;;  %v29_v2 = vld [vmem:[%s385_s2 + $0x8] sm:$0xff]  ;;  %236 = vmatprep.subr.bf16.mxu1 %v255_v0  ;;  %v30_v3 = vld [vmem:[%s385_s2 + $0x10] sm:$0xff]  ;;  %s143_s15 = sadd.f32 -80.0, %s386_s0 }
   0x2   :  { %v213_v4 = vpack.c.bf16 %v29_v2, %v28_v1  ;;  %v31_v5 = vld [vmem:[%s385_s2 + $0x18] sm:$0xff]  ;;  %197 = vmatprep.mubr.msk.f32.mxu0 %vm256_vm0, %v257_v6  ;;  %206 = vmatprep.mubr.msk.f32.mxu1 %vm256_vm0, %v257_v6  ;;  %v32_v8 = vld [vmem:[%s385_s2 + $0x20] sm:$0xff]  ;;  %v33_v9 = vld [vmem:[%s385_s2 + $0x28] sm:$0xff] }
   0x3   :  { %v216_v7 = vpack.c.bf16 %v31_v5, %v30_v3  ;;  %v219_v10 = vpack.c.bf16 %v33_v9, %v32_v8  ;;  %v34_v11 = vld [vmem:[%s385_s2 + $0x30] sm:$0xff]  ;;  %v35_v12 = vld [vmem:[%s385_s2 + $0x38] sm:$0xff]  ;;  %v36_v14 = vld [vmem:[%s385_s2 + $0x40] sm:$0xff]  ;;  %v22_v27 = vstv %s143_s15 }
   0x4   :  { %214 = vmatpush3.bf16.msra.mxu0 %v213_v4  ;;  %244 = vmatpush3.bf16.msra.mxu1 %v213_v4  ;;  %v222_v13 = vpack.c.bf16 %v35_v12, %v34_v11  ;;  %v37_v15 = vld [vmem:[%s385_s2 + $0x48] sm:$0xff]  ;;  %v38_v17 = vld [vmem:[%s385_s2 + $0x50] sm:$0xff]  ;;  %v39_v18 = vld [vmem:[%s385_s2 + $0x58] sm:$0xff] }
   0x5   :  { %215 = vmatprep.subr.bf16.mxu0 %v255_v0  ;;  %237 = vmatprep.subr.bf16.mxu1 %v255_v0  ;;  %v225_v16 = vpack.c.bf16 %v37_v15, %v36_v14  ;;  %v228_v19 = vpack.c.bf16 %v39_v18, %v38_v17  ;;  %v40_v20 = vld [vmem:[%s385_s2 + $0x60] sm:$0xff]  ;;  %v41_v21 = vld [vmem:[%s385_s2 + $0x68] sm:$0xff]  ;;  %v42_v23 = vld [vmem:[%s385_s2 + $0x70] sm:$0xff] }
   0x6   :  { %v231_v22 = vpack.c.bf16 %v41_v21, %v40_v20  ;;  %v43_v24 = vld [vmem:[%s385_s2 + $0x78] sm:$0xff]  ;;  %v17_v26 = vld [vmem:[%s387_s1] sm:$0xff]  ;;  %v18_v31 = vld [vmem:[%s387_s1 + $0x8] sm:$0xff] }
   0x7   :  { %v234_v25 = vpack.c.bf16 %v43_v24, %v42_v23  ;;  %v20_v28 = vld [vmem:[%s387_s1 + $0x18] sm:$0xff]  ;;  %v23_v29 = vmax.f32 %v17_v26, %v22_v27  ;;  %v21_v32 = vld [vmem:[%s387_s1 + $0x20] sm:$0xff]  ;;  %v24_v33 = vmax.f32 %v18_v31, %v22_v27  ;;  %v19_v35 = vld [vmem:[%s387_s1 + $0x10] sm:$0xff] }
   0x8   :  { %217 = vmatpush3.bf16.msra.mxu0 %v216_v7  ;;  %245 = vmatpush3.bf16.msra.mxu1 %v216_v7  ;;  %v26_v30 = vmax.f32 %v20_v28, %v22_v27  ;;  %v27_v34 = vmax.f32 %v21_v32, %v22_v27  ;;  %v25_v36 = vmax.f32 %v19_v35, %v22_v27 }
   0x9   :  { %218 = vmatprep.subr.bf16.mxu0 %v255_v0  ;;  %238 = vmatprep.subr.bf16.mxu1 %v255_v0 }
   0xc   :  { %220 = vmatpush3.bf16.msra.mxu0 %v219_v10  ;;  %246 = vmatpush3.bf16.msra.mxu1 %v219_v10 }
   0xd   :  { %221 = vmatprep.subr.bf16.mxu0 %v255_v0  ;;  %239 = vmatprep.subr.bf16.mxu1 %v255_v0 }
  0x10   :  { %223 = vmatpush3.bf16.msra.mxu0 %v222_v13  ;;  %247 = vmatpush3.bf16.msra.mxu1 %v222_v13 }
  0x11   :  { %224 = vmatprep.subr.bf16.mxu0 %v255_v0  ;;  %240 = vmatprep.subr.bf16.mxu1 %v255_v0 }
  0x14   :  { %226 = vmatpush3.bf16.msra.mxu0 %v225_v16  ;;  %248 = vmatpush3.bf16.msra.mxu1 %v225_v16 }
  0x15   :  { %227 = vmatprep.subr.bf16.mxu0 %v255_v0  ;;  %241 = vmatprep.subr.bf16.mxu1 %v255_v0 }
  0x18   :  { %229 = vmatpush3.bf16.msra.mxu0 %v228_v19  ;;  %249 = vmatpush3.bf16.msra.mxu1 %v228_v19 }
  0x19   :  { %230 = vmatprep.subr.bf16.mxu0 %v255_v0  ;;  %242 = vmatprep.subr.bf16.mxu1 %v255_v0 }
  0x1c   :  { %232 = vmatpush3.bf16.msra.mxu0 %v231_v22  ;;  %250 = vmatpush3.bf16.msra.mxu1 %v231_v22 }
  0x1d   :  { %233 = vmatprep.subr.bf16.mxu0 %v255_v0  ;;  %243 = vmatprep.subr.bf16.mxu1 %v255_v0 }
  0x20   :  { %235 = vmatpush3.bf16.msra.mxu0 %v234_v25  ;;  %251 = vmatpush3.bf16.msra.mxu1 %v234_v25 }
  0x23   :  { %198 = vmatmul.mubr.f32.vlgmr.msra.gmra.mrb[0].mxu0 %v23_v29  ;;  %207 = vmatmul.mubr.f32.vlgmr.msra.gmra.mrb[0].mxu1 %v26_v30 }
  0x24   :  { %200 = vmatprep.mubr.msk.f32.mxu0 %vm256_vm0, %v257_v6  ;;  %209 = vmatprep.mubr.msk.f32.mxu1 %vm256_vm0, %v257_v6 }
  0x27   :  { %201 = vmatmul.mubr.f32.gmra.mrb[2].mxu0 %v24_v33  ;;  %210 = vmatmul.mubr.f32.gmra.mrb[2].mxu1 %v27_v34 }
  0x28   :  { %203 = vmatprep.mubr.msk.f32.mxu0 %vm256_vm0, %v257_v6 }
  0x2b   :  { %204 = vmatmul.mubr.f32.gmra.mrb[4].mxu0 %v25_v36 }
  0xf6   :  { %v110_v37 = vpop.f32.mrb[0].mxu0  ;;  %v125_v38 = vpop.f32.mrb[0].mxu1 }
  0xf7   :  { %134 = vst [vmem:[%s388_s3] sm:$0xff] %v110_v37  ;;  %v199_v39 = vpop.f32.mrb[1].mxu0  ;;  %137 = vst [vmem:[%s388_s3 + $0x18] sm:$0xff] %v125_v38  ;;  %v208_v40 = vpop.f32.mrb[1].mxu1 }
  0xfa   :  { %v115_v41 = vpop.f32.mrb[2].mxu0  ;;  %v130_v42 = vpop.f32.mrb[2].mxu1 }
  0xfb   :  { %135 = vst [vmem:[%s388_s3 + $0x8] sm:$0xff] %v115_v41  ;;  %v202_v43 = vpop.f32.mrb[3].mxu0  ;;  %138 = vst [vmem:[%s388_s3 + $0x20] sm:$0xff] %v130_v42  ;;  %v211_v44 = vpop.f32.mrb[3].mxu1 }
  0xfe   :  { %v120_v45 = vpop.f32.mrb[4].mxu0 }
  0xff   :  { %136 = vst [vmem:[%s388_s3 + $0x10] sm:$0xff] %v120_v45  ;;  %v205_v46 = vpop.f32.mrb[5].mxu0 }

// kernel: forward.2
= control target key start
LH: loop header
LB: loop body
LE: loop exit
PB: predicated region body
PF: predicated region fallthrough
CT: control target
= control target key end

     0   :  { %v1087_v3 = vmov 0.0   ;;  %vm132_vm0 = vcmask 1040384   ;;  %vm116_vm1 = vcmask 531456   ;;  %s1817_s1 = inlined_call_operand.vmem [shape: f32[321,256], index: 1, kind: input, shape index: {}]   ;;  %s1818_s2 = inlined_call_operand.vmem [shape: f32[321,256], index: 2, kind: input, shape index: {}]   ;;  %s1819_s0 = inlined_call_operand.vmem [shape: f32[40,321], index: 0, kind: input, shape index: {}]   ;;  %s1820_s3 = inlined_call_operand.vmem [shape: f32[256,128], index: 3, kind: input, shape index: {}]   ;;  %s1821_s4 = inlined_call_operand.vmem [shape: f32[40,128], index: 4, kind: output, shape index: {0}]   ;;  %s1822_s5 = inlined_call_operand.vmem [shape: f32[8,128], index: 5, kind: output, shape index: {1}]  }
   0x1   :  { %v35_v0 = vld [vmem:[%s1817_s1 + $0x8] sm:$0xff]  ;;  %v37_v1 = vld [vmem:[%s1817_s1 + $0x18] sm:$0xff]  ;;  %298 = vmatprep.mubr.f32.mxu1 %v1087_v3  ;;  %v34_v6 = vld [vmem:[%s1817_s1] sm:$0xff] }
   0x2   :  { %v99_v2 = vld [vmem:[%s1817_s1 + $0x208] sm:$0xff]  ;;  %v864_v4 = vpack.c.bf16 %v37_v1, %v35_v0  ;;  %v101_v5 = vld [vmem:[%s1817_s1 + $0x218] sm:$0xff]  ;;  %v36_v7 = vld [vmem:[%s1817_s1 + $0x10] sm:$0xff] }
   0x3   :  { %v928_v8 = vpack.c.bf16 %v101_v5, %v99_v2  ;;  %v866_v9 = vpack.c.bf16 %v36_v7, %v34_v6  ;;  %v98_v10 = vld [vmem:[%s1817_s1 + $0x200] sm:$0xff]  ;;  %v100_v11 = vld [vmem:[%s1817_s1 + $0x210] sm:$0xff]  ;;  %v39_v12 = vld [vmem:[%s1817_s1 + $0x28] sm:$0xff] }
   0x4   :  { %865 = vmatprep.subr.bf16.mxu0 %v864_v4  ;;  %v930_v13 = vpack.c.bf16 %v100_v11, %v98_v10  ;;  %v41_v14 = vld [vmem:[%s1817_s1 + $0x38] sm:$0xff]  ;;  %v103_v15 = vld [vmem:[%s1817_s1 + $0x228] sm:$0xff]  ;;  %v38_v19 = vld [vmem:[%s1817_s1 + $0x20] sm:$0xff] }
   0x5   :  { %v105_v16 = vld [vmem:[%s1817_s1 + $0x238] sm:$0xff]  ;;  %929 = vmatprep.subr.bf16.mxu1 %v928_v8  ;;  %867 = vmatpush1.bf16.msra.mxu0 %v866_v9  ;;  %v868_v17 = vpack.c.bf16 %v41_v14, %v39_v12  ;;  %v40_v20 = vld [vmem:[%s1817_s1 + $0x30] sm:$0xff]  ;;  %v102_v21 = vld [vmem:[%s1817_s1 + $0x220] sm:$0xff] }
   0x6   :  { %v932_v18 = vpack.c.bf16 %v105_v16, %v103_v15  ;;  %931 = vmatpush1.bf16.msra.mxu1 %v930_v13  ;;  %v870_v22 = vpack.c.bf16 %v40_v20, %v38_v19  ;;  %v104_v23 = vld [vmem:[%s1817_s1 + $0x230] sm:$0xff]  ;;  %v43_v24 = vld [vmem:[%s1817_s1 + $0x48] sm:$0xff]  ;;  %v45_v25 = vld [vmem:[%s1817_s1 + $0x58] sm:$0xff] }
   0x7   :  { %869 = vmatprep.subr.bf16.mxu0 %v868_v17  ;;  %v934_v26 = vpack.c.bf16 %v104_v23, %v102_v21  ;;  %v872_v27 = vpack.c.bf16 %v45_v25, %v43_v24  ;;  %v107_v28 = vld [vmem:[%s1817_s1 + $0x248] sm:$0xff]  ;;  %v109_v29 = vld [vmem:[%s1817_s1 + $0x258] sm:$0xff]  ;;  %v42_v30 = vld [vmem:[%s1817_s1 + $0x40] sm:$0xff] }
   0x8   :  { %933 = vmatprep.subr.bf16.mxu1 %v932_v18  ;;  %v936_v31 = vpack.c.bf16 %v109_v29, %v107_v28  ;;  %v44_v32 = vld [vmem:[%s1817_s1 + $0x50] sm:$0xff]  ;;  %v106_v33 = vld [vmem:[%s1817_s1 + $0x240] sm:$0xff]  ;;  %v47_v36 = vld [vmem:[%s1817_s1 + $0x68] sm:$0xff] }
   0x9   :  { %v108_v34 = vld [vmem:[%s1817_s1 + $0x250] sm:$0xff]  ;;  %871 = vmatpush1.bf16.msra.mxu0 %v870_v22  ;;  %v874_v35 = vpack.c.bf16 %v44_v32, %v42_v30  ;;  %v49_v37 = vld [vmem:[%s1817_s1 + $0x78] sm:$0xff]  ;;  %v111_v38 = vld [vmem:[%s1817_s1 + $0x268] sm:$0xff] }
   0xa   :  { %935 = vmatpush1.bf16.msra.mxu1 %v934_v26  ;;  %873 = vmatprep.subr.bf16.mxu0 %v872_v27  ;;  %v938_v39 = vpack.c.bf16 %v108_v34, %v106_v33  ;;  %v876_v40 = vpack.c.bf16 %v49_v37, %v47_v36  ;;  %v113_v41 = vld [vmem:[%s1817_s1 + $0x278] sm:$0xff]  ;;  %v46_v42 = vld [vmem:[%s1817_s1 + $0x60] sm:$0xff]  ;;  %v48_v43 = vld [vmem:[%s1817_s1 + $0x70] sm:$0xff] }
   0xb   :  { %937 = vmatprep.subr.bf16.mxu1 %v936_v31  ;;  %v940_v44 = vpack.c.bf16 %v113_v41, %v111_v38  ;;  %v110_v45 = vld [vmem:[%s1817_s1 + $0x260] sm:$0xff]  ;;  %v112_v46 = vld [vmem:[%s1817_s1 + $0x270] sm:$0xff]  ;;  %v51_v47 = vld [vmem:[%s1817_s1 + $0x88] sm:$0xff]  ;;  %v878_v49 = vpack.c.bf16 %v48_v43, %v46_v42 }
   0xc   :  { %v53_v48 = vld [vmem:[%s1817_s1 + $0x98] sm:$0xff]  ;;  %v942_v50 = vpack.c.bf16 %v112_v46, %v110_v45  ;;  %v50_v52 = vld [vmem:[%s1817_s1 + $0x80] sm:$0xff]  ;;  %v52_v53 = vld [vmem:[%s1817_s1 + $0x90] sm:$0xff] }
   0xd   :  { %875 = vmatpush1.bf16.msra.mxu0 %v874_v35  ;;  %v880_v51 = vpack.c.bf16 %v53_v48, %v51_v47  ;;  %v55_v54 = vld [vmem:[%s1817_s1 + $0xa8] sm:$0xff]  ;;  %v57_v55 = vld [vmem:[%s1817_s1 + $0xb8] sm:$0xff]  ;;  %v882_v59 = vpack.c.bf16 %v52_v53, %v50_v52  ;;  %v329_v60 = vld [vmem:[%s1818_s2] sm:$0xff] }
   0xe   :  { %939 = vmatpush1.bf16.msra.mxu1 %v938_v39  ;;  %877 = vmatprep.subr.bf16.mxu0 %v876_v40  ;;  %v115_v56 = vld [vmem:[%s1817_s1 + $0x288] sm:$0x1]  ;;  %v332_v58 = vld [vmem:[%s1818_s2 + $0x18] sm:$0xff]  ;;  %v331_v61 = vld [vmem:[%s1818_s2 + $0x10] sm:$0xff]  ;;  %v884_v63 = vpack.c.bf16 %v57_v55, %v55_v54 }
   0xf   :  { %941 = vmatprep.subr.bf16.mxu1 %v940_v44  ;;  %v330_v57 = vld [vmem:[%s1818_s2 + $0x8] sm:$0xff]  ;;  %v54_v62 = vld [vmem:[%s1817_s1 + $0xa0] sm:$0xff]  ;;  %v56_v0 = vld [vmem:[%s1817_s1 + $0xb0] sm:$0xff]  ;;  %v946_v9 = vpack.c.bf16 %v331_v61, %v329_v60 }
  0x10   :  { %v334_v1 = vld [vmem:[%s1818_s2 + $0x28] sm:$0xff]  ;;  %v336_v2 = vld [vmem:[%s1818_s2 + $0x38] sm:$0xff]  ;;  %v114_v4 = vld [vmem:[%s1817_s1 + $0x280] sm:$0x1]  ;;  %v944_v5 = vpack.c.bf16 %v332_v58, %v330_v57  ;;  %v886_v10 = vpack.c.bf16 %v56_v0, %v54_v62 }
  0x11   :  { %879 = vmatpush1.bf16.msra.mxu0 %v878_v49  ;;  %v59_v6 = vld [vmem:[%s1817_s1 + $0xc8] sm:$0xff]  ;;  %v61_v7 = vld [vmem:[%s1817_s1 + $0xd8] sm:$0xff]  ;;  %v1273_v8 = vld [vmem:[%s1819_s0 + $0x10] sm:$0xff]  ;;  %v948_v11 = vpack.c.bf16 %v336_v2, %v334_v1 }
  0x12   :  { %943 = vmatpush1.bf16.msra.mxu1 %v942_v50  ;;  %881 = vmatprep.subr.bf16.mxu0 %v880_v51  ;;  %v333_v12 = vld [vmem:[%s1818_s2 + $0x20] sm:$0xff]  ;;  %v335_v13 = vld [vmem:[%s1818_s2 + $0x30] sm:$0xff]  ;;  %v888_v15 = vpack.c.bf16 %v61_v7, %v59_v6  ;;  %v338_v17 = vld [vmem:[%s1818_s2 + $0x48] sm:$0xff] }
  0x13   :  { %803 = vmatprep.subr.msk.mxu1 %vm132_vm0, %v115_v56  ;;  %v58_v14 = vld [vmem:[%s1817_s1 + $0xc0] sm:$0xff]  ;;  %v60_v16 = vld [vmem:[%s1817_s1 + $0xd0] sm:$0xff]  ;;  %v340_v18 = vld [vmem:[%s1818_s2 + $0x58] sm:$0xff]  ;;  %v950_v21 = vpack.c.bf16 %v335_v13, %v333_v12 }
  0x14   :  { %v63_v19 = vld [vmem:[%s1817_s1 + $0xe8] sm:$0xff]  ;;  %v65_v20 = vld [vmem:[%s1817_s1 + $0xf8] sm:$0xff]  ;;  %v890_v22 = vpack.c.bf16 %v60_v16, %v58_v14  ;;  %v952_v23 = vpack.c.bf16 %v340_v18, %v338_v17  ;;  %v337_v24 = vld [vmem:[%s1818_s2 + $0x40] sm:$0xff] }
  0x15   :  { %883 = vmatpush1.bf16.msra.mxu0 %v882_v59  ;;  %v339_v25 = vld [vmem:[%s1818_s2 + $0x50] sm:$0xff]  ;;  %v62_v26 = vld [vmem:[%s1817_s1 + $0xe0] sm:$0xff]  ;;  %v892_v27 = vpack.c.bf16 %v65_v20, %v63_v19  ;;  %v342_v29 = vld [vmem:[%s1818_s2 + $0x68] sm:$0xff] }
  0x16   :  { %804 = vmatpush1.msk.msra.mxu1 %vm132_vm0, %v114_v4  ;;  %885 = vmatprep.subr.bf16.mxu0 %v884_v63  ;;  %v64_v28 = vld [vmem:[%s1817_s1 + $0xf0] sm:$0xff]  ;;  %v344_v30 = vld [vmem:[%s1818_s2 + $0x78] sm:$0xff]  ;;  %v67_v31 = vld [vmem:[%s1817_s1 + $0x108] sm:$0xff]  ;;  %v954_v33 = vpack.c.bf16 %v339_v25, %v337_v24 }
  0x17   :  { %805 = vmatmul.mubr.msk.f32.vlgmr.msra.gmra.mrb[0].mxu1 %vm116_vm1, %v1273_v8  ;;  %945 = vmatprep.subr.bf16.mxu1 %v944_v5  ;;  %v69_v32 = vld [vmem:[%s1817_s1 + $0x118] sm:$0xff]  ;;  %v894_v34 = vpack.c.bf16 %v64_v28, %v62_v26  ;;  %v956_v35 = vpack.c.bf16 %v344_v30, %v342_v29  ;;  %v341_v36 = vld [vmem:[%s1818_s2 + $0x60] sm:$0xff]  ;;  %v343_v37 = vld [vmem:[%s1818_s2 + $0x70] sm:$0xff] }
  0x18   :  { %947 = vmatpush1.bf16.msra.mxu1 %v946_v9  ;;  %304 = vmatprep.mubr.f32.mxu1 %v1087_v3  ;;  %v66_v38 = vld [vmem:[%s1817_s1 + $0x100] sm:$0xff]  ;;  %v896_v39 = vpack.c.bf16 %v69_v32, %v67_v31  ;;  %v68_v40 = vld [vmem:[%s1817_s1 + $0x110] sm:$0xff]  ;;  %v346_v41 = vld [vmem:[%s1818_s2 + $0x88] sm:$0xff]  ;;  %v958_v45 = vpack.c.bf16 %v343_v37, %v341_v36 }
  0x19   :  { %887 = vmatpush1.bf16.msra.mxu0 %v886_v10  ;;  %949 = vmatprep.subr.bf16.mxu1 %v948_v11  ;;  %v348_v42 = vld [vmem:[%s1818_s2 + $0x98] sm:$0xff]  ;;  %v71_v43 = vld [vmem:[%s1817_s1 + $0x128] sm:$0xff]  ;;  %v898_v46 = vpack.c.bf16 %v68_v40, %v66_v38  ;;  %v345_v48 = vld [vmem:[%s1818_s2 + $0x80] sm:$0xff] }
  0x1a   :  { %889 = vmatprep.subr.bf16.mxu0 %v888_v15  ;;  %v73_v44 = vld [vmem:[%s1817_s1 + $0x138] sm:$0xff]  ;;  %v960_v47 = vpack.c.bf16 %v348_v42, %v346_v41  ;;  %v347_v49 = vld [vmem:[%s1818_s2 + $0x90] sm:$0xff]  ;;  %v70_v50 = vld [vmem:[%s1817_s1 + $0x120] sm:$0xff] }
  0x1b   :  { %v900_v51 = vpack.c.bf16 %v73_v44, %v71_v43  ;;  %v72_v52 = vld [vmem:[%s1817_s1 + $0x130] sm:$0xff]  ;;  %v350_v53 = vld [vmem:[%s1818_s2 + $0xa8] sm:$0xff]  ;;  %v352_v54 = vld [vmem:[%s1818_s2 + $0xb8] sm:$0xff]  ;;  %v962_v57 = vpack.c.bf16 %v347_v49, %v345_v48 }
  0x1c   :  { %951 = vmatpush1.bf16.msra.mxu1 %v950_v21  ;;  %v75_v55 = vld [vmem:[%s1817_s1 + $0x148] sm:$0xff]  ;;  %v77_v56 = vld [vmem:[%s1817_s1 + $0x158] sm:$0xff]  ;;  %v902_v58 = vpack.c.bf16 %v72_v52, %v70_v50  ;;  %v964_v59 = vpack.c.bf16 %v352_v54, %v350_v53  ;;  %v349_v60 = vld [vmem:[%s1818_s2 + $0xa0] sm:$0xff] }
  0x1d   :  { %891 = vmatpush1.bf16.msra.mxu0 %v890_v22  ;;  %953 = vmatprep.subr.bf16.mxu1 %v952_v23  ;;  %v351_v61 = vld [vmem:[%s1818_s2 + $0xb0] sm:$0xff]  ;;  %v74_v62 = vld [vmem:[%s1817_s1 + $0x140] sm:$0xff]  ;;  %v904_v63 = vpack.c.bf16 %v77_v56, %v75_v55  ;;  %v354_v1 = vld [vmem:[%s1818_s2 + $0xc8] sm:$0xff] }
  0x1e   :  { %893 = vmatprep.subr.bf16.mxu0 %v892_v27  ;;  %v76_v0 = vld [vmem:[%s1817_s1 + $0x150] sm:$0xff]  ;;  %v356_v2 = vld [vmem:[%s1818_s2 + $0xd8] sm:$0xff]  ;;  %v79_v4 = vld [vmem:[%s1817_s1 + $0x168] sm:$0xff]  ;;  %v966_v6 = vpack.c.bf16 %v351_v61, %v349_v60 }
  0x1f   :  { %v81_v5 = vld [vmem:[%s1817_s1 + $0x178] sm:$0xff]  ;;  %v906_v7 = vpack.c.bf16 %v76_v0, %v74_v62  ;;  %v968_v9 = vpack.c.bf16 %v356_v2, %v354_v1  ;;  %v353_v10 = vld [vmem:[%s1818_s2 + $0xc0] sm:$0xff]  ;;  %v355_v11 = vld [vmem:[%s1818_s2 + $0xd0] sm:$0xff] }
  0x20   :  { %955 = vmatpush1.bf16.msra.mxu1 %v954_v33  ;;  %v78_v12 = vld [vmem:[%s1817_s1 + $0x160] sm:$0xff]  ;;  %v908_v13 = vpack.c.bf16 %v81_v5, %v79_v4  ;;  %v80_v14 = vld [vmem:[%s1817_s1 + $0x170] sm:$0xff]  ;;  %v358_v15 = vld [vmem:[%s1818_s2 + $0xe8] sm:$0xff]  ;;  %v970_v19 = vpack.c.bf16 %v355_v11, %v353_v10 }
  0x21   :  { %895 = vmatpush1.bf16.msra.mxu0 %v894_v34  ;;  %957 = vmatprep.subr.bf16.mxu1 %v956_v35  ;;  %v360_v16 = vld [vmem:[%s1818_s2 + $0xf8] sm:$0xff]  ;;  %v83_v17 = vld [vmem:[%s1817_s1 + $0x188] sm:$0xff]  ;;  %v357_v20 = vld [vmem:[%s1818_s2 + $0xe0] sm:$0xff]  ;;  %v910_v22 = vpack.c.bf16 %v80_v14, %v78_v12 }
  0x22   :  { %897 = vmatprep.subr.bf16.mxu0 %v896_v39  ;;  %v85_v18 = vld [vmem:[%s1817_s1 + $0x198] sm:$0xff]  ;;  %v1429_v21 = vld [vmem:[%s1819_s0 + $0x8] sm:$0xff]  ;;  %v972_v23 = vpack.c.bf16 %v360_v16, %v358_v15  ;;  %v359_v24 = vld [vmem:[%s1818_s2 + $0xf0] sm:$0xff] }
  0x23   :  { %v82_v25 = vld [vmem:[%s1817_s1 + $0x180] sm:$0xff]  ;;  %v1440_v26 = vld [vmem:[%s1819_s0 + $0x28] sm:$0xff]  ;;  %v912_v27 = vpack.c.bf16 %v85_v18, %v83_v17  ;;  %v84_v28 = vld [vmem:[%s1817_s1 + $0x190] sm:$0xff]  ;;  %203 = vmatprep.mubr.f32.mxu0 %v1429_v21  ;;  %v974_v33 = vpack.c.bf16 %v359_v24, %v357_v20 }
  0x24   :  { %959 = vmatpush1.bf16.msra.mxu1 %v958_v45  ;;  %v362_v29 = vld [vmem:[%s1818_s2 + $0x108] sm:$0xff]  ;;  %v364_v30 = vld [vmem:[%s1818_s2 + $0x118] sm:$0xff]  ;;  %v1464_v34 = vld [vmem:[%s1819_s0 + $0x40] sm:$0xff]  ;;  %v914_v35 = vpack.c.bf16 %v84_v28, %v82_v25 }
  0x25   :  { %899 = vmatpush1.bf16.msra.mxu0 %v898_v46  ;;  %961 = vmatprep.subr.bf16.mxu1 %v960_v47  ;;  %v87_v31 = vld [vmem:[%s1817_s1 + $0x1a8] sm:$0xff]  ;;  %v89_v32 = vld [vmem:[%s1817_s1 + $0x1b8] sm:$0xff]  ;;  %v976_v36 = vpack.c.bf16 %v364_v30, %v362_v29  ;;  %v361_v37 = vld [vmem:[%s1818_s2 + $0x100] sm:$0xff] }
  0x26   :  { %901 = vmatprep.subr.bf16.mxu0 %v900_v51  ;;  %806 = vmatmul.mubr.msk.f32.gmra.mrb[2].mxu1 %vm116_vm1, %v1440_v26  ;;  %v363_v38 = vld [vmem:[%s1818_s2 + $0x110] sm:$0xff]  ;;  %v86_v39 = vld [vmem:[%s1817_s1 + $0x1a0] sm:$0xff]  ;;  %v916_v40 = vpack.c.bf16 %v89_v32, %v87_v31  ;;  %v366_v42 = vld [vmem:[%s1818_s2 + $0x128] sm:$0xff] }
  0x27   :  { %310 = vmatprep.mubr.f32.mxu1 %v1087_v3  ;;  %v88_v41 = vld [vmem:[%s1817_s1 + $0x1b0] sm:$0xff]  ;;  %v368_v43 = vld [vmem:[%s1818_s2 + $0x138] sm:$0xff]  ;;  %v91_v44 = vld [vmem:[%s1817_s1 + $0x1c8] sm:$0xff]  ;;  %v978_v46 = vpack.c.bf16 %v363_v38, %v361_v37 }
  0x28   :  { %963 = vmatpush1.bf16.msra.mxu1 %v962_v57  ;;  %v93_v45 = vld [vmem:[%s1817_s1 + $0x1d8] sm:$0xff]  ;;  %v918_v48 = vpack.c.bf16 %v88_v41, %v86_v39  ;;  %v980_v49 = vpack.c.bf16 %v368_v43, %v366_v42  ;;  %v365_v50 = vld [vmem:[%s1818_s2 + $0x120] sm:$0xff]  ;;  %v367_v51 = vld [vmem:[%s1818_s2 + $0x130] sm:$0xff] }
  0x29   :  { %903 = vmatpush1.bf16.msra.mxu0 %v902_v58  ;;  %965 = vmatprep.subr.bf16.mxu1 %v964_v59  ;;  %v1496_v47 = vld [vmem:[%s1819_s0 + $0x58] sm:$0xff]  ;;  %v90_v52 = vld [vmem:[%s1817_s1 + $0x1c0] sm:$0xff]  ;;  %v920_v53 = vpack.c.bf16 %v93_v45, %v91_v44  ;;  %v92_v54 = vld [vmem:[%s1817_s1 + $0x1d0] sm:$0xff]  ;;  %v982_v59 = vpack.c.bf16 %v367_v51, %v365_v50 }
  0x2a   :  { %905 = vmatprep.subr.bf16.mxu0 %v904_v63  ;;  %807 = vmatmul.mubr.msk.f32.gmra.mrb[4].mxu1 %vm116_vm1, %v1464_v34  ;;  %v370_v55 = vld [vmem:[%s1818_s2 + $0x148] sm:$0xff]  ;;  %v372_v56 = vld [vmem:[%s1818_s2 + $0x158] sm:$0xff]  ;;  %v1528_v60 = vld [vmem:[%s1819_s0 + $0x70] sm:$0xff]  ;;  %v922_v61 = vpack.c.bf16 %v92_v54, %v90_v52 }
  0x2b   :  { %316 = vmatprep.mubr.f32.mxu1 %v1087_v3  ;;  %v95_v57 = vld [vmem:[%s1817_s1 + $0x1e8] sm:$0xff]  ;;  %v97_v58 = vld [vmem:[%s1817_s1 + $0x1f8] sm:$0xff]  ;;  %v984_v62 = vpack.c.bf16 %v372_v56, %v370_v55  ;;  %v369_v63 = vld [vmem:[%s1818_s2 + $0x140] sm:$0xff] }
  0x2c   :  { %967 = vmatpush1.bf16.msra.mxu1 %v966_v6  ;;  %v371_v0 = vld [vmem:[%s1818_s2 + $0x150] sm:$0xff]  ;;  %v94_v1 = vld [vmem:[%s1817_s1 + $0x1e0] sm:$0xff]  ;;  %v924_v2 = vpack.c.bf16 %v97_v58, %v95_v57  ;;  %v374_v5 = vld [vmem:[%s1818_s2 + $0x168] sm:$0xff] }
  0x2d   :  { %907 = vmatpush1.bf16.msra.mxu0 %v906_v7  ;;  %969 = vmatprep.subr.bf16.mxu1 %v968_v9  ;;  %v96_v4 = vld [vmem:[%s1817_s1 + $0x1f0] sm:$0xff]  ;;  %v376_v6 = vld [vmem:[%s1818_s2 + $0x178] sm:$0xff]  ;;  %v986_v7 = vpack.c.bf16 %v371_v0, %v369_v63  ;;  %v373_v11 = vld [vmem:[%s1818_s2 + $0x160] sm:$0xff] }
  0x2e   :  { %909 = vmatprep.subr.bf16.mxu0 %v908_v13  ;;  %808 = vmatmul.mubr.msk.f32.gmra.mrb[6].mxu1 %vm116_vm1, %v1496_v47  ;;  %v926_v9 = vpack.c.bf16 %v96_v4, %v94_v1  ;;  %v988_v10 = vpack.c.bf16 %v376_v6, %v374_v5  ;;  %v375_v12 = vld [vmem:[%s1818_s2 + $0x170] sm:$0xff]  ;;  %v378_v13 = vld [vmem:[%s1818_s2 + $0x188] sm:$0xff]  ;;  %v380_v14 = vld [vmem:[%s1818_s2 + $0x198] sm:$0xff] }
  0x2f   :  { %322 = vmatprep.mubr.f32.mxu1 %v1087_v3  ;;  %v990_v15 = vpack.c.bf16 %v375_v12, %v373_v11  ;;  %v19_v16 = vld [vmem:[%s1819_s0] sm:$0xff]  ;;  %v992_v17 = vpack.c.bf16 %v380_v14, %v378_v13  ;;  %v22_v24 = vld [vmem:[%s1819_s0 + $0x18] sm:$0xff]  ;;  %v383_v28 = vld [vmem:[%s1818_s2 + $0x1b0] sm:$0xff] }
  0x30   :  { %971 = vmatpush1.bf16.msra.mxu1 %v970_v19  ;;  %v377_v18 = vld [vmem:[%s1818_s2 + $0x180] sm:$0xff]  ;;  %v379_v19 = vld [vmem:[%s1818_s2 + $0x190] sm:$0xff]  ;;  %v26_v29 = vld [vmem:[%s1819_s0 + $0x38] sm:$0xff] }
  0x31   :  { %911 = vmatpush1.bf16.msra.mxu0 %v910_v22  ;;  %973 = vmatprep.subr.bf16.mxu1 %v972_v23  ;;  %v23_v20 = vld [vmem:[%s1819_s0 + $0x20] sm:$0xff]  ;;  %v384_v22 = vld [vmem:[%s1818_s2 + $0x1b8] sm:$0xff]  ;;  %v994_v23 = vpack.c.bf16 %v379_v19, %v377_v18  ;;  %v386_v30 = vld [vmem:[%s1818_s2 + $0x1c8] sm:$0xff] }
  0x32   :  { %913 = vmatprep.subr.bf16.mxu0 %v912_v27  ;;  %809 = vmatmul.mubr.msk.f32.gmra.mrb[8].mxu1 %vm116_vm1, %v1528_v60  ;;  %v381_v27 = vld [vmem:[%s1818_s2 + $0x1a0] sm:$0xff]  ;;  %v388_v31 = vld [vmem:[%s1818_s2 + $0x1d8] sm:$0xff]  ;;  %v387_v37 = vld [vmem:[%s1818_s2 + $0x1d0] sm:$0xff] }
  0x33   :  { %481 = vmatprep.mubr.f32.mxu1 %v1429_v21  ;;  %v382_v21 = vld [vmem:[%s1818_s2 + $0x1a8] sm:$0xff]  ;;  %v998_v32 = vpack.c.bf16 %v383_v28, %v381_v27  ;;  %v29_v38 = vld [vmem:[%s1819_s0 + $0x50] sm:$0xff]  ;;  %v389_v44 = vld [vmem:[%s1818_s2 + $0x1e0] sm:$0xff] }
  0x34   :  { %975 = vmatpush1.bf16.msra.mxu1 %v974_v33  ;;  %v996_v25 = vpack.c.bf16 %v384_v22, %v382_v21  ;;  %v25_v33 = vld [vmem:[%s1819_s0 + $0x30] sm:$0xff]  ;;  %v390_v39 = vld [vmem:[%s1818_s2 + $0x1e8] sm:$0xff]  ;;  %v31_v51 = vld [vmem:[%s1819_s0 + $0x60] sm:$0xff] }
  0x35   :  { %915 = vmatpush1.bf16.msra.mxu0 %v914_v35  ;;  %977 = vmatprep.subr.bf16.mxu1 %v976_v36  ;;  %v1000_v35 = vpack.c.bf16 %v388_v31, %v386_v30  ;;  %v385_v36 = vld [vmem:[%s1818_s2 + $0x1c0] sm:$0xff]  ;;  %v28_v42 = vld [vmem:[%s1819_s0 + $0x48] sm:$0xff]  ;;  %v391_v45 = vld [vmem:[%s1818_s2 + $0x1f0] sm:$0xff] }
  0x36   :  { %917 = vmatprep.subr.bf16.mxu0 %v916_v40  ;;  %v392_v40 = vld [vmem:[%s1818_s2 + $0x1f8] sm:$0xff]  ;;  %v1002_v41 = vpack.c.bf16 %v387_v37, %v385_v36  ;;  %v1006_v50 = vpack.c.bf16 %v391_v45, %v389_v44  ;;  %v395_v54 = vld [vmem:[%s1818_s2 + $0x210] sm:$0xff]  ;;  %v398_v55 = vld [vmem:[%s1818_s2 + $0x228] sm:$0xff] }
  0x37   :  { %v1004_v43 = vpack.c.bf16 %v392_v40, %v390_v39  ;;  %v400_v56 = vld [vmem:[%s1818_s2 + $0x238] sm:$0xff]  ;;  %v403_v4 = vld [vmem:[%s1818_s2 + $0x250] sm:$0xff]  ;;  %v406_v5 = vld [vmem:[%s1818_s2 + $0x268] sm:$0xff] }
  0x38   :  { %979 = vmatpush1.bf16.msra.mxu1 %v978_v46  ;;  %v32_v46 = vld [vmem:[%s1819_s0 + $0x68] sm:$0xff]  ;;  %v1012_v58 = vpack.c.bf16 %v400_v56, %v398_v55  ;;  %v404_v63 = vld [vmem:[%s1818_s2 + $0x258] sm:$0xff]  ;;  %v407_v11 = vld [vmem:[%s1818_s2 + $0x270] sm:$0xff] }
  0x39   :  { %919 = vmatpush1.bf16.msra.mxu0 %v918_v48  ;;  %981 = vmatprep.subr.bf16.mxu1 %v980_v49  ;;  %v394_v48 = vld [vmem:[%s1818_s2 + $0x208] sm:$0xff]  ;;  %v396_v49 = vld [vmem:[%s1818_s2 + $0x218] sm:$0xff]  ;;  %v409_v14 = vld [vmem:[%s1818_s2 + $0x280] sm:$0x1] }
  0x3a   :  { %921 = vmatprep.subr.bf16.mxu0 %v920_v53  ;;  %v1008_v52 = vpack.c.bf16 %v396_v49, %v394_v48  ;;  %v393_v53 = vld [vmem:[%s1818_s2 + $0x200] sm:$0xff]  ;;  %v408_v6 = vld [vmem:[%s1818_s2 + $0x278] sm:$0xff]  ;;  %v410_v13 = vld [vmem:[%s1818_s2 + $0x288] sm:$0x1] }
  0x3b   :  { %v1010_v57 = vpack.c.bf16 %v395_v54, %v393_v53  ;;  %v639_v18 = vld [vmem:[%s1820_s3 + $0x10] sm:$0xff]  ;;  %v640_v19 = vld [vmem:[%s1820_s3 + $0x18] sm:$0xff]  ;;  %v657_v21 = vld [vmem:[%s1820_s3 + $0xa0] sm:$0xff] }
  0x3c   :  { %983 = vmatpush1.bf16.msra.mxu1 %v982_v59  ;;  %v397_v59 = vld [vmem:[%s1818_s2 + $0x220] sm:$0xff]  ;;  %v658_v22 = vld [vmem:[%s1820_s3 + $0xa8] sm:$0xff]  ;;  %v659_v27 = vld [vmem:[%s1820_s3 + $0xb0] sm:$0xff] }
  0x3d   :  { %923 = vmatpush1.bf16.msra.mxu0 %v922_v61  ;;  %985 = vmatprep.subr.bf16.mxu1 %v984_v62  ;;  %v399_v61 = vld [vmem:[%s1818_s2 + $0x230] sm:$0xff]  ;;  %v402_v62 = vld [vmem:[%s1818_s2 + $0x248] sm:$0xff]  ;;  %v644_v31 = vld [vmem:[%s1820_s3 + $0x38] sm:$0xff] }
  0x3e   :  { %925 = vmatprep.subr.bf16.mxu0 %v924_v2  ;;  %v1014_v0 = vpack.c.bf16 %v399_v61, %v397_v59  ;;  %v1016_v1 = vpack.c.bf16 %v404_v63, %v402_v62  ;;  %v401_v2 = vld [vmem:[%s1818_s2 + $0x240] sm:$0xff]  ;;  %v643_v30 = vld [vmem:[%s1820_s3 + $0x30] sm:$0xff]  ;;  %v646_v39 = vld [vmem:[%s1820_s3 + $0x48] sm:$0xff] }
  0x3f   :  { %v1038_v36 = vpack.c.bf16 %v644_v31, %v643_v30  ;;  %v663_v40 = vld [vmem:[%s1820_s3 + $0xd0] sm:$0xff]  ;;  %v648_v45 = vld [vmem:[%s1820_s3 + $0x58] sm:$0xff]  ;;  %v666_v48 = vld [vmem:[%s1820_s3 + $0xe8] sm:$0xff] }
  0x40   :  { %987 = vmatpush1.bf16.msra.mxu1 %v986_v7  ;;  %v1018_v7 = vpack.c.bf16 %v403_v4, %v401_v2  ;;  %v647_v44 = vld [vmem:[%s1820_s3 + $0x50] sm:$0xff]  ;;  %v668_v55 = vld [vmem:[%s1820_s3 + $0xf8] sm:$0xff] }
  0x41   :  { %927 = vmatpush1.bf16.msra.mxu0 %v926_v9  ;;  %989 = vmatprep.subr.bf16.mxu1 %v988_v10  ;;  %v1020_v9 = vpack.c.bf16 %v408_v6, %v406_v5  ;;  %v405_v10 = vld [vmem:[%s1818_s2 + $0x260] sm:$0xff]  ;;  %v1046_v49 = vpack.c.bf16 %v648_v45, %v647_v44  ;;  %v667_v54 = vld [vmem:[%s1820_s3 + $0xf0] sm:$0xff] }
  0x42   :  { %v1022_v12 = vpack.c.bf16 %v407_v11, %v405_v10  ;;  %v1052_v56 = vpack.c.bf16 %v668_v55, %v667_v54 }
  0x44   :  { %991 = vmatpush1.bf16.msra.mxu1 %v990_v15  ;;  %204 = vmatmul.mubr.f32.vlgmr.msra.gmra.mrb[0].mxu0 %v19_v16 }
  0x45   :  { %993 = vmatprep.subr.bf16.mxu1 %v992_v17  ;;  %209 = vmatprep.mubr.f32.mxu0 %v23_v20 }
  0x48   :  { %995 = vmatpush1.bf16.msra.mxu1 %v994_v23  ;;  %210 = vmatmul.mubr.f32.gmra.mrb[2].mxu0 %v22_v24  ;;  %v1032_v23 = vpack.c.bf16 %v658_v22, %v657_v21 }
  0x49   :  { %997 = vmatprep.subr.bf16.mxu1 %v996_v25  ;;  %215 = vmatprep.mubr.f32.mxu0 %v26_v29  ;;  %v642_v25 = vld [vmem:[%s1820_s3 + $0x28] sm:$0xff] }
  0x4c   :  { %999 = vmatpush1.bf16.msra.mxu1 %v998_v32  ;;  %216 = vmatmul.mubr.f32.gmra.mrb[4].mxu0 %v25_v33 }
  0x4d   :  { %1001 = vmatprep.subr.bf16.mxu1 %v1000_v35  ;;  %221 = vmatprep.mubr.f32.mxu0 %v29_v38  ;;  %v662_v35 = vld [vmem:[%s1820_s3 + $0xc8] sm:$0xff] }
  0x50   :  { %1003 = vmatpush1.bf16.msra.mxu1 %v1002_v41  ;;  %222 = vmatmul.mubr.f32.gmra.mrb[6].mxu0 %v28_v42  ;;  %v664_v41 = vld [vmem:[%s1820_s3 + $0xd8] sm:$0xff] }
  0x51   :  { %1005 = vmatprep.subr.bf16.mxu1 %v1004_v43  ;;  %227 = vmatprep.mubr.f32.mxu0 %v32_v46  ;;  %v1044_v43 = vpack.c.bf16 %v664_v41, %v663_v40 }
  0x54   :  { %1007 = vmatpush1.bf16.msra.mxu1 %v1006_v50  ;;  %228 = vmatmul.mubr.f32.gmra.mrb[8].mxu0 %v31_v51 }
  0x55   :  { %1009 = vmatprep.subr.bf16.mxu1 %v1008_v52  ;;  %v650_v52 = vld [vmem:[%s1820_s3 + $0x68] sm:$0xff] }
  0x57   :  { %482 = vmatmul.mubr.f32.vlgmr.msra.gmra.mrb[10].mxu1 %v19_v16  ;;  %v656_v16 = vld [vmem:[%s1820_s3 + $0x98] sm:$0xff] }
  0x58   :  { %1011 = vmatpush1.bf16.msra.mxu1 %v1010_v57  ;;  %487 = vmatprep.mubr.f32.mxu1 %v23_v20  ;;  %v1030_v20 = vpack.c.bf16 %v640_v19, %v639_v18  ;;  %v651_v57 = vld [vmem:[%s1820_s3 + $0x70] sm:$0xff] }
  0x59   :  { %1013 = vmatprep.subr.bf16.mxu1 %v1012_v58  ;;  %v652_v58 = vld [vmem:[%s1820_s3 + $0x78] sm:$0xff] }
  0x5a   :  { %v1054_v59 = vpack.c.bf16 %v652_v58, %v651_v57 }
  0x5b   :  { %488 = vmatmul.mubr.f32.gmra.mrb[12].mxu1 %v22_v24  ;;  %v641_v24 = vld [vmem:[%s1820_s3 + $0x20] sm:$0xff] }
  0x5c   :  { %1015 = vmatpush1.bf16.msra.mxu1 %v1014_v0  ;;  %493 = vmatprep.mubr.f32.mxu1 %v26_v29  ;;  %v1034_v28 = vpack.c.bf16 %v642_v25, %v641_v24  ;;  %v660_v29 = vld [vmem:[%s1820_s3 + $0xb8] sm:$0xff] }
  0x5d   :  { %1017 = vmatprep.subr.bf16.mxu1 %v1016_v1  ;;  %v1036_v32 = vpack.c.bf16 %v660_v29, %v659_v27 }
  0x5f   :  { %494 = vmatmul.mubr.f32.gmra.mrb[14].mxu1 %v25_v33  ;;  %v661_v33 = vld [vmem:[%s1820_s3 + $0xc0] sm:$0xff] }
  0x60   :  { %1019 = vmatpush1.bf16.msra.mxu1 %v1018_v7  ;;  %499 = vmatprep.mubr.f32.mxu1 %v29_v38  ;;  %v1040_v37 = vpack.c.bf16 %v662_v35, %v661_v33  ;;  %v645_v38 = vld [vmem:[%s1820_s3 + $0x40] sm:$0xff] }
  0x61   :  { %1021 = vmatprep.subr.bf16.mxu1 %v1020_v9 }
  0x63   :  { %500 = vmatmul.mubr.f32.gmra.mrb[16].mxu1 %v28_v42  ;;  %v1042_v42 = vpack.c.bf16 %v646_v39, %v645_v38 }
  0x64   :  { %1023 = vmatpush1.bf16.msra.mxu1 %v1022_v12  ;;  %505 = vmatprep.mubr.f32.mxu1 %v32_v46  ;;  %v665_v46 = vld [vmem:[%s1820_s3 + $0xe0] sm:$0xff] }
  0x65   :  { %810 = vmatprep.subr.msk.mxu1 %vm132_vm0, %v410_v13  ;;  %v1048_v50 = vpack.c.bf16 %v666_v48, %v665_v46 }
  0x67   :  { %506 = vmatmul.mubr.f32.gmra.mrb[18].mxu1 %v31_v51  ;;  %v649_v51 = vld [vmem:[%s1820_s3 + $0x60] sm:$0xff] }
  0x68   :  { %811 = vmatpush1.msk.msra.mxu1 %vm132_vm0, %v409_v14  ;;  %576 = vmatprep.mubr.f32.mxu1 %v1087_v3  ;;  %v1050_v53 = vpack.c.bf16 %v650_v52, %v649_v51 }
  0x6b   :  { %812 = vmatmul.mubr.msk.f32.vlgmr.msra.gmra.mrb[10].mxu1 %vm116_vm1, %v1273_v8  ;;  %v653_v8 = vld [vmem:[%s1820_s3 + $0x80] sm:$0xff] }
  0x6c   :  { %582 = vmatprep.mubr.f32.mxu1 %v1087_v3 }
  0x6f   :  { %813 = vmatmul.mubr.msk.f32.gmra.mrb[12].mxu1 %vm116_vm1, %v1440_v26  ;;  %v654_v26 = vld [vmem:[%s1820_s3 + $0x88] sm:$0xff] }
  0x70   :  { %588 = vmatprep.mubr.f32.mxu1 %v1087_v3  ;;  %v1024_v15 = vpack.c.bf16 %v654_v26, %v653_v8 }
  0x72   :  { %1025 = vmatprep.subr.bf16.mxu0 %v1024_v15 }
  0x73   :  { %814 = vmatmul.mubr.msk.f32.gmra.mrb[14].mxu1 %vm116_vm1, %v1464_v34  ;;  %v637_v34 = vld [vmem:[%s1820_s3] sm:$0xff] }
  0x74   :  { %594 = vmatprep.mubr.f32.mxu1 %v1087_v3 }
  0x77   :  { %815 = vmatmul.mubr.msk.f32.gmra.mrb[16].mxu1 %vm116_vm1, %v1496_v47 }
  0x78   :  { %600 = vmatprep.mubr.f32.mxu1 %v1087_v3  ;;  %v638_v3 = vld [vmem:[%s1820_s3 + $0x8] sm:$0xff] }
  0x79   :  { %v1026_v47 = vpack.c.bf16 %v638_v3, %v637_v34 }
  0x7b   :  { %816 = vmatmul.mubr.msk.f32.gmra.mrb[18].mxu1 %vm116_vm1, %v1528_v60  ;;  %1027 = vmatpush3.bf16.msra.mxu0 %v1026_v47  ;;  %v655_v60 = vld [vmem:[%s1820_s3 + $0x90] sm:$0xff] }
  0x7c   :  { %v1028_v17 = vpack.c.bf16 %v656_v16, %v655_v60 }
  0x7e   :  { %1029 = vmatprep.subr.bf16.mxu0 %v1028_v17 }
  0x7f   :  { %1031 = vmatpush3.bf16.msra.mxu0 %v1030_v20 }
  0x80   :  { %1033 = vmatprep.subr.bf16.mxu0 %v1032_v23 }
  0x83   :  { %1035 = vmatpush3.bf16.msra.mxu0 %v1034_v28 }
  0x84   :  { %1037 = vmatprep.subr.bf16.mxu0 %v1036_v32 }
  0x87   :  { %1039 = vmatpush3.bf16.msra.mxu0 %v1038_v36 }
  0x88   :  { %1041 = vmatprep.subr.bf16.mxu0 %v1040_v37 }
  0x8b   :  { %1043 = vmatpush3.bf16.msra.mxu0 %v1042_v42 }
  0x8c   :  { %1045 = vmatprep.subr.bf16.mxu0 %v1044_v43 }
  0x8f   :  { %1047 = vmatpush3.bf16.msra.mxu0 %v1046_v49 }
  0x90   :  { %1049 = vmatprep.subr.bf16.mxu0 %v1048_v50 }
  0x93   :  { %1051 = vmatpush3.bf16.msra.mxu0 %v1050_v53 }
  0x94   :  { %1053 = vmatprep.subr.bf16.mxu0 %v1052_v56 }
  0x97   :  { %1055 = vmatpush3.bf16.msra.mxu0 %v1054_v59 }
  0xea   :  { %v300_v61 = vpop.f32.mrb[0].mxu1 }
  0xeb   :  { %v302_v62 = vpop.f32.mrb[1].mxu1 }
  0xf9   :  { %v306_v63 = vpop.f32.mrb[2].mxu1 }
  0xfa   :  { %v308_v0 = vpop.f32.mrb[3].mxu1 }
  0xfd   :  { %v312_v1 = vpop.f32.mrb[4].mxu1 }
  0xfe   :  { %v314_v2 = vpop.f32.mrb[5].mxu1 }
 0x101   :  { %v318_v4 = vpop.f32.mrb[6].mxu1 }
 0x102   :  { %v320_v5 = vpop.f32.mrb[7].mxu1 }
 0x105   :  { %v324_v6 = vpop.f32.mrb[8].mxu1 }
 0x106   :  { %v326_v7 = vpop.f32.mrb[9].mxu1 }
 0x117   :  { %v205_v9 = vpop.f32.mrb[0].mxu0 }
 0x118   :  { %v301_v10 = vadd.f32 %v300_v61, %v205_v9  ;;  %v207_v11 = vpop.f32.mrb[1].mxu0 }
 0x119   :  { %v303_v12 = vadd.f32 %v302_v62, %v207_v11 }
 0x11a   :  { %v607_v24 = vmul.f32 %v301_v10, %v301_v10 }
 0x11b   :  { %v211_v13 = vpop.f32.mrb[2].mxu0  ;;  %v608_v28 = vmul.f32 %v303_v12, %v303_v12 }
 0x11c   :  { %v307_v14 = vadd.f32 %v306_v63, %v211_v13  ;;  %v213_v8 = vpop.f32.mrb[3].mxu0 }
 0x11d   :  { %v309_v26 = vadd.f32 %v308_v0, %v213_v8 }
 0x11e   :  { %v609_v33 = vmul.f32 %v307_v14, %v307_v14 }
 0x11f   :  { %v217_v15 = vpop.f32.mrb[4].mxu0  ;;  %v610_v37 = vmul.f32 %v309_v26, %v309_v26 }
 0x120   :  { %v313_v34 = vadd.f32 %v312_v1, %v217_v15  ;;  %v219_v3 = vpop.f32.mrb[5].mxu0 }
 0x121   :  { %v315_v47 = vadd.f32 %v314_v2, %v219_v3 }
 0x122   :  { %v611_v42 = vmul.f32 %v313_v34, %v313_v34 }
 0x123   :  { %v223_v60 = vpop.f32.mrb[6].mxu0  ;;  %v612_v45 = vmul.f32 %v315_v47, %v315_v47 }
 0x124   :  { %v319_v16 = vadd.f32 %v318_v4, %v223_v60  ;;  %v225_v17 = vpop.f32.mrb[7].mxu0 }
 0x125   :  { %v321_v18 = vadd.f32 %v320_v5, %v225_v17 }
 0x126   :  { %v613_v51 = vmul.f32 %v319_v16, %v319_v16 }
 0x127   :  { %v229_v19 = vpop.f32.mrb[8].mxu0  ;;  %v614_v54 = vmul.f32 %v321_v18, %v321_v18 }
 0x128   :  { %v325_v20 = vadd.f32 %v324_v6, %v229_v19  ;;  %v231_v21 = vpop.f32.mrb[9].mxu0 }
 0x129   :  { %v327_v22 = vadd.f32 %v326_v7, %v231_v21 }
 0x12a   :  { %v615_v59 = vmul.f32 %v325_v20, %v325_v20 }
 0x12b   :  { %v616_v63 = vmul.f32 %v327_v22, %v327_v22 }
 0x13e   :  { %v578_v23 = vpop.f32.mrb[10].mxu1 }
 0x13f   :  { %v617_v25 = vmul.f32 %v578_v23, %v578_v23  ;;  %v580_v27 = vpop.f32.mrb[11].mxu1 }
 0x140   :  { %v618_v29 = vmul.f32 %v580_v27, %v580_v27 }
 0x141   :  { %v627_v30 = vadd.f32 %v617_v25, %v607_v24 }
 0x142   :  { %v628_v31 = vadd.f32 %v618_v29, %v608_v28  ;;  %v584_v32 = vpop.f32.mrb[12].mxu1 }
 0x143   :  { %v619_v35 = vmul.f32 %v584_v32, %v584_v32  ;;  %v586_v36 = vpop.f32.mrb[13].mxu1 }
 0x144   :  { %v620_v38 = vmul.f32 %v586_v36, %v586_v36  ;;  %733 = vmatprep.mubr.f32.mxu0 %v628_v31 }
 0x145   :  { %v629_v39 = vadd.f32 %v619_v35, %v609_v33  ;;  %734 = vmatmul.mubr.f32.vlgmr.msra.gmra.mrb[10].mxu0 %v627_v30 }
 0x146   :  { %v630_v40 = vadd.f32 %v620_v38, %v610_v37  ;;  %v590_v41 = vpop.f32.mrb[14].mxu1 }
 0x147   :  { %v621_v43 = vmul.f32 %v590_v41, %v590_v41  ;;  %v592_v44 = vpop.f32.mrb[15].mxu1 }
 0x148   :  { %v622_v46 = vmul.f32 %v592_v44, %v592_v44  ;;  %738 = vmatprep.mubr.f32.mxu0 %v630_v40 }
 0x149   :  { %v631_v48 = vadd.f32 %v621_v43, %v611_v42  ;;  %739 = vmatmul.mubr.f32.gmra.mrb[12].mxu0 %v629_v39 }
 0x14a   :  { %v632_v49 = vadd.f32 %v622_v46, %v612_v45  ;;  %v596_v50 = vpop.f32.mrb[16].mxu1 }
 0x14b   :  { %v623_v52 = vmul.f32 %v596_v50, %v596_v50  ;;  %v598_v53 = vpop.f32.mrb[17].mxu1 }
 0x14c   :  { %v624_v55 = vmul.f32 %v598_v53, %v598_v53  ;;  %743 = vmatprep.mubr.f32.mxu0 %v632_v49 }
 0x14d   :  { %v633_v56 = vadd.f32 %v623_v52, %v613_v51  ;;  %744 = vmatmul.mubr.f32.gmra.mrb[14].mxu0 %v631_v48 }
 0x14e   :  { %v634_v57 = vadd.f32 %v624_v55, %v614_v54  ;;  %v602_v58 = vpop.f32.mrb[18].mxu1 }
 0x14f   :  { %v625_v61 = vmul.f32 %v602_v58, %v602_v58  ;;  %v604_v62 = vpop.f32.mrb[19].mxu1 }
 0x150   :  { %v626_v0 = vmul.f32 %v604_v62, %v604_v62  ;;  %748 = vmatprep.mubr.f32.mxu0 %v634_v57 }
 0x151   :  { %v635_v1 = vadd.f32 %v625_v61, %v615_v59  ;;  %749 = vmatmul.mubr.f32.gmra.mrb[16].mxu0 %v633_v56 }
 0x152   :  { %v636_v2 = vadd.f32 %v626_v0, %v616_v63 }
 0x154   :  { %753 = vmatprep.mubr.f32.mxu0 %v636_v2 }
 0x155   :  { %754 = vmatmul.mubr.f32.gmra.mrb[18].mxu0 %v635_v1 }
 0x218   :  { %v849_v4 = vpop.f32.mrb[10].mxu0 }
 0x219   :  { %v850_v5 = vpop.f32.mrb[11].mxu0 }
 0x21a   :  { %v851_v6 = vadd.f32 %v850_v5, %v849_v4 }
 0x21c   :  { %v759_v7 = vmax.f32 %v851_v6, 1e-10  ;;  %v852_v9 = vpop.f32.mrb[12].mxu0 }
 0x21d   :  { %v853_v10 = vpop.f32.mrb[13].mxu0 }
 0x21e   :  { %1077 = vlog2.f32 %v759_v7  ;;  %v854_v11 = vadd.f32 %v853_v10, %v852_v9 }
 0x220   :  { %v760_v12 = vmax.f32 %v854_v11, 1e-10  ;;  %v855_v13 = vpop.f32.mrb[14].mxu0 }
 0x221   :  { %v856_v14 = vpop.f32.mrb[15].mxu0 }
 0x222   :  { %1079 = vlog2.f32 %v760_v12  ;;  %v857_v8 = vadd.f32 %v856_v14, %v855_v13 }
 0x224   :  { %v761_v26 = vmax.f32 %v857_v8, 1e-10  ;;  %v858_v15 = vpop.f32.mrb[16].mxu0 }
 0x225   :  { %v859_v34 = vpop.f32.mrb[17].mxu0 }
 0x226   :  { %1081 = vlog2.f32 %v761_v26  ;;  %v860_v3 = vadd.f32 %v859_v34, %v858_v15 }
 0x228   :  { %v1078_v47 = vpop.eup %1077  ;;  %v762_v60 = vmax.f32 %v860_v3, 1e-10  ;;  %v861_v16 = vpop.f32.mrb[18].mxu0 }
 0x229   :  { %v765_v17 = vmul.f32 0.6931472, %v1078_v47  ;;  %v862_v18 = vpop.f32.mrb[19].mxu0 }
 0x22a   :  { %1083 = vlog2.f32 %v762_v60  ;;  %v863_v19 = vadd.f32 %v862_v18, %v861_v16 }
 0x22b   :  { %v774_v20 = vmul.f32 4.3429446, %v765_v17 }
 0x22c   :  { %v1080_v21 = vpop.eup %1079  ;;  %v763_v22 = vmax.f32 %v863_v19, 1e-10 }
 0x22d   :  { %779 = vst [vmem:[%s1821_s4] sm:$0xff] %v774_v20  ;;  %v767_v23 = vmul.f32 0.6931472, %v1080_v21 }
 0x22e   :  { %1085 = vlog2.f32 %v763_v22 }
 0x22f   :  { %v775_v24 = vmul.f32 4.3429446, %v767_v23 }
 0x230   :  { %v1082_v25 = vpop.eup %1081 }
 0x231   :  { %780 = vst [vmem:[%s1821_s4 + $0x8] sm:$0xff] %v775_v24  ;;  %v769_v27 = vmul.f32 0.6931472, %v1082_v25 }
 0x233   :  { %v776_v28 = vmul.f32 4.3429446, %v769_v27 }
 0x234   :  { %v1084_v29 = vpop.eup %1083 }
 0x235   :  { %781 = vst [vmem:[%s1821_s4 + $0x10] sm:$0xff] %v776_v28  ;;  %v771_v30 = vmul.f32 0.6931472, %v1084_v29 }
 0x237   :  { %v777_v31 = vmul.f32 4.3429446, %v771_v30 }
 0x238   :  { %v1086_v32 = vpop.eup %1085 }
 0x239   :  { %782 = vst [vmem:[%s1821_s4 + $0x18] sm:$0xff] %v777_v31  ;;  %v786_v33 = vmax.f32 %v776_v28, %v777_v31  ;;  %v773_v35 = vmul.f32 0.6931472, %v1086_v32 }
 0x23b   :  { %v778_v36 = vmul.f32 4.3429446, %v773_v35 }
 0x23d   :  { %783 = vst [vmem:[%s1821_s4 + $0x20] sm:$0xff] %v778_v36  ;;  %v784_v37 = vmax.f32 %v774_v20, %v778_v36 }
 0x23f   :  { %v785_v38 = vmax.f32 %v784_v37, %v775_v24 }
 0x241   :  { %v787_v39 = vmax.f32 %v785_v38, %v786_v33 }
 0x243   :  { %v788_v40 = vrot.slane %v787_v39, 4 }
 0x245   :  { %v789_v41 = vmax.f32 %v787_v39, %v788_v40 }
 0x247   :  { %v790_v42 = vrot.slane %v789_v41, 2 }
 0x249   :  { %v791_v43 = vmax.f32 %v789_v41, %v790_v42 }
 0x24b   :  { %v792_v44 = vrot.slane %v791_v43, 1 }
 0x24d   :  { %v793_v45 = vmax.f32 %v791_v43, %v792_v44 }
 0x24f   :  { %794 = vst [vmem:[%s1822_s5] sm:$0xff] %v793_v45 }

</bundles_post_ra>
